<compile_context>
chip_gen: v6e
topology: v6e:2x2x1
jax: 0.10.0
libtpu: 0.0.40
codegen_flags: <defaults>
</compile_context>

<pallas_src>
import functools

import jax
import jax.numpy as jnp
import numpy as np
from jax.experimental import pallas as pl
from jax.experimental.pallas import tpu as pltpu

LOG_STD_MAX = 2.0
LOG_STD_MIN = -5.0
_LS_A = 0.5 * (LOG_STD_MAX - LOG_STD_MIN)   # 3.5
_LS_C = LOG_STD_MIN + _LS_A                 # -1.5

HIDDEN = 256
MAX_TILE_B = 1024        # batch tile for the 1-D grid


def _round_up(x, m):
    return ((x + m - 1) // m) * m


def actor_kernel(x_ref, w1_ref, b1_ref, w2_ref, b2_ref, wh_ref, bh_ref, out_ref, *, split):
    x = x_ref[...]  # f32

    # fc1 + ReLU (kept fully f32: obs dynamic range, negligible cost at obs_dim-wide K)
    h1 = jnp.dot(x, w1_ref[...], preferred_element_type=jnp.float32) + b1_ref[...]
    h1 = jnp.maximum(h1, 0.0)

    # fc2 + ReLU (cast activation to weight dtype so bf16 weights hit native MXU rate)
    h2 = jnp.dot(h1.astype(w2_ref.dtype), w2_ref[...],
                 preferred_element_type=jnp.float32) + b2_ref[...]
    h2 = jnp.maximum(h2, 0.0)

    # fused head: one matmul produces [mean | log_std_pre] in one lane-dense slab
    head = jnp.dot(h2.astype(wh_ref.dtype), wh_ref[...],
                   preferred_element_type=jnp.float32) + bh_ref[...]

    # tanh (EUP) on the whole slab, affine fold, then select the mean half back.
    log_std = _LS_A * jnp.tanh(head) + _LS_C
    lane = jax.lax.broadcasted_iota(jnp.int32, head.shape, 1)
    out = jnp.where(lane < split, head, log_std)

    # single full-width, unmasked, 128-aligned store
    out_ref[...] = out.astype(out_ref.dtype)

    # TODO(synk): get_action's Normal.rsample / tanh-squash / log_prob tail is not
    # fused here yet (would use pltpu.prng_seed + pltpu.prng_random_bits in this
    # epilogue to avoid a second HBM round-trip of mean/log_std).


def pack_params(params, act_dim, dtype=jnp.float32):
    """Fuse fc_mean/fc_logstd into one zero-padded lane-dense head weight.

    act_dim <= 64  -> 128-lane head (mean cols [0:act_dim], log_std cols [64:64+act_dim])
    act_dim <= 128 -> 256-lane head (split at 128)
    `dtype` applies only to the fc2 / head matmul operands (bf16 OK on v5e/v6e/v7x);
    fc1 weights and all biases stay f32.
    """
    assert act_dim <= 128, "fused head supports act_dim <= 128"
    head_lanes = 128 if act_dim <= 64 else 256
    split = head_lanes // 2

    wh = jnp.zeros((HIDDEN, head_lanes), jnp.float32)
    wh = wh.at[:, :act_dim].set(params["wm"])
    wh = wh.at[:, split:split + act_dim].set(params["ws"])
    bh = jnp.zeros((1, head_lanes), jnp.float32)
    bh = bh.at[:, :act_dim].set(params["bm"])
    bh = bh.at[:, split:split + act_dim].set(params["bs"])

    return dict(
        w1=params["w1"].astype(jnp.float32), b1=params["b1"].astype(jnp.float32),
        w2=params["w2"].astype(dtype),       b2=params["b2"].astype(jnp.float32),
        wh=wh.astype(dtype),                 bh=bh.astype(jnp.float32),
        act_dim=act_dim, head_lanes=head_lanes, split=split,
    )


def _choose_tile_b(b_sub):
    # Guarantee >= 2 grid steps once there is real work, so v7x's two TensorCores
    # both run under dimension_semantics=("parallel",).
    target = _round_up(-(-b_sub // 2), 8) if b_sub >= 16 else b_sub
    tile = min(MAX_TILE_B, target)
    # Full MXU M-passes: 256-multiples on v6e/v7x (also 128-mult for v5e) once large.
    if tile >= 256:
        tile = (tile // 256) * 256
    return tile


def actor_forward(x, packed, *, out_dtype=jnp.float32):
    """x: (B, obs_dim) float32. packed: output of pack_params. Returns (mean, log_std)."""
    B, obs_dim = x.shape
    act_dim = packed["act_dim"]
    head_lanes = packed["head_lanes"]
    split = packed["split"]

    b_sub = _round_up(B, 8)
    tile_b = _choose_tile_b(b_sub)
    num_tiles = -(-b_sub // tile_b)
    b_pad = num_tiles * tile_b
    if b_pad != B:
        x = jnp.pad(x, ((0, b_pad - B), (0, 0)))
    x = x.astype(jnp.float32)

    const = lambda shape: pl.BlockSpec(shape, lambda i: (0, 0))   # VMEM-resident weights
    kernel = functools.partial(actor_kernel, split=split)

    out = pl.pallas_call(
        kernel,
        out_shape=jax.ShapeDtypeStruct((b_pad, head_lanes), out_dtype),
        grid=(num_tiles,),
        in_specs=[
            pl.BlockSpec((tile_b, obs_dim), lambda i: (i, 0)),    # x (streamed over batch)
            const((obs_dim, HIDDEN)), const((1, HIDDEN)),          # w1, b1 (f32)
            const((HIDDEN, HIDDEN)), const((1, HIDDEN)),           # w2, b2
            const((HIDDEN, head_lanes)), const((1, head_lanes)),   # fused head
        ],
        out_specs=pl.BlockSpec((tile_b, head_lanes), lambda i: (i, 0)),
        compiler_params=pltpu.CompilerParams(
            dimension_semantics=("parallel",)),
    )(x, packed["w1"], packed["b1"], packed["w2"], packed["b2"],
      packed["wh"], packed["bh"])

    mean = out[:B, :act_dim].astype(jnp.float32)
    log_std = out[:B, split:split + act_dim].astype(jnp.float32)
    return mean, log_std


def init_params(key, obs_dim, act_dim):
    """Deterministic init mimicking PyTorch nn.Linear defaults (U[-1/sqrt(fan_in), +]).
    Weights stored transposed vs. PyTorch, i.e. (in, out), so y = x @ W + b."""
    def linear(k, fan_in, fan_out):
        kw, kb = jax.random.split(k)
        bound = 1.0 / np.sqrt(fan_in)
        w = jax.random.uniform(kw, (fan_in, fan_out), jnp.float32, -bound, bound)
        b = jax.random.uniform(kb, (1, fan_out), jnp.float32, -bound, bound)
        return w, b

    k1, k2, k3, k4 = jax.random.split(key, 4)
    w1, b1 = linear(k1, obs_dim, HIDDEN)
    w2, b2 = linear(k2, HIDDEN, HIDDEN)
    wm, bm = linear(k3, HIDDEN, act_dim)
    ws, bs = linear(k4, HIDDEN, act_dim)
    return dict(w1=w1, b1=b1, w2=w2, b2=b2, wm=wm, bm=bm, ws=ws, bs=bs)


def actor_forward_ref(x, p):
    h1 = jnp.maximum(x @ p["w1"] + p["b1"], 0.0)
    h2 = jnp.maximum(h1 @ p["w2"] + p["b2"], 0.0)
    mean = h2 @ p["wm"] + p["bm"]
    log_std = jnp.tanh(h2 @ p["ws"] + p["bs"])
    log_std = LOG_STD_MIN + 0.5 * (LOG_STD_MAX - LOG_STD_MIN) * (log_std + 1.0)
    return mean, log_std


if __name__ == "__main__":
    key = jax.random.PRNGKey(0)
    k_obs, k_obs2, k_params = jax.random.split(key, 3)

    batch = 2
    obs_dim = 8   # prod(env.single_observation_space.shape)
    act_dim = 4   # prod(env.single_action_space.shape)

    x = jax.random.normal(k_obs, (batch, obs_dim), dtype=jnp.float32)
    params = init_params(k_params, obs_dim, act_dim)

    # f32 path (default): exact match to the reference.
    packed_f32 = pack_params(params, act_dim, dtype=jnp.float32)
    mean, log_std = actor_forward(x, packed_f32)
    jax.block_until_ready((mean, log_std))

    mean_ref, log_std_ref = actor_forward_ref(x, params)
    np.testing.assert_allclose(np.asarray(mean), np.asarray(mean_ref), rtol=1e-5, atol=1e-5)
    np.testing.assert_allclose(np.asarray(log_std), np.asarray(log_std_ref), rtol=1e-5, atol=1e-5)

    # Larger, non-aligned batch: exercises batch padding + the >=2-step parallel grid.
    batch_big = 300
    x_big = jax.random.normal(k_obs2, (batch_big, obs_dim), dtype=jnp.float32)
    mean_b, log_std_b = actor_forward(x_big, packed_f32)
    jax.block_until_ready((mean_b, log_std_b))
    mean_b_ref, log_std_b_ref = actor_forward_ref(x_big, params)
    np.testing.assert_allclose(np.asarray(mean_b), np.asarray(mean_b_ref), rtol=1e-5, atol=1e-5)
    np.testing.assert_allclose(np.asarray(log_std_b), np.asarray(log_std_b_ref), rtol=1e-5, atol=1e-5)

    # bf16 fc2/head weights (fc1 + all biases stay f32, f32 MXU accumulation):
    # native MXU rate + halved weight DMA on v5e/v6e/v7x.  Loose tolerance.
    packed_bf16 = pack_params(params, act_dim, dtype=jnp.bfloat16)
    mean_bf, log_std_bf = actor_forward(x, packed_bf16)
    jax.block_until_ready((mean_bf, log_std_bf))
    np.testing.assert_allclose(np.asarray(mean_bf), np.asarray(mean_ref), rtol=3e-2, atol=3e-2)
    np.testing.assert_allclose(np.asarray(log_std_bf), np.asarray(log_std_ref), rtol=3e-2, atol=3e-2)

    print("KERNEL_OK")
</pallas_src>

<mosaic_0001>
module attributes {stable_mosaic.version = 11 : i64} {
  func.func @actor_kernel(%arg0: i32, %arg1: memref<8x8xf32, #tpu.memory_space<vmem>>, %arg2: memref<8x256xf32, #tpu.memory_space<vmem>>, %arg3: memref<1x256xf32, #tpu.memory_space<vmem>>, %arg4: memref<256x256xf32, #tpu.memory_space<vmem>>, %arg5: memref<1x256xf32, #tpu.memory_space<vmem>>, %arg6: memref<256x128xf32, #tpu.memory_space<vmem>>, %arg7: memref<1x128xf32, #tpu.memory_space<vmem>>, %arg8: memref<8x128xf32, #tpu.memory_space<vmem>>) attributes {dimension_semantics = [#tpu.dimension_semantics<parallel>], iteration_bounds = array<i64: 1>, scalar_prefetch = 0 : i64, scratch_operands = 0 : i64, tpu.core_type = #tpu.core_type<tc>, window_params = [{transform_indices = @transform_0, window_bounds = array<i64: 8, 8>}, {pipeline_mode = #tpu.pipeline_mode<synchronous>, transform_indices = @transform_1, window_bounds = array<i64: 8, 256>}, {pipeline_mode = #tpu.pipeline_mode<synchronous>, transform_indices = @transform_2, window_bounds = array<i64: 1, 256>}, {pipeline_mode = #tpu.pipeline_mode<synchronous>, transform_indices = @transform_3, window_bounds = array<i64: 256, 256>}, {pipeline_mode = #tpu.pipeline_mode<synchronous>, transform_indices = @transform_4, window_bounds = array<i64: 1, 256>}, {pipeline_mode = #tpu.pipeline_mode<synchronous>, transform_indices = @transform_5, window_bounds = array<i64: 256, 128>}, {pipeline_mode = #tpu.pipeline_mode<synchronous>, transform_indices = @transform_6, window_bounds = array<i64: 1, 128>}, {transform_indices = @transform_7, window_bounds = array<i64: 8, 128>}]} {
    %c0 = arith.constant 0 : index
    %c0_0 = arith.constant 0 : index
    %0 = vector.load %arg1[%c0, %c0_0] : memref<8x8xf32, #tpu.memory_space<vmem>>, vector<8x8xf32>
    %c0_1 = arith.constant 0 : index
    %c0_2 = arith.constant 0 : index
    %1 = vector.load %arg2[%c0_1, %c0_2] : memref<8x256xf32, #tpu.memory_space<vmem>>, vector<8x256xf32>
    %cst = arith.constant dense<0.000000e+00> : vector<8x256xf32>
    %2 = tpu.matmul %0, %1, %cst {dimension_numbers = #tpu.dot_dimension_numbers<[1], [0], [0], [1], [0, 0, 1, 1], [], []>} : vector<8x8xf32>, vector<8x256xf32>, vector<8x256xf32> -> vector<8x256xf32>
    %c0_3 = arith.constant 0 : index
    %c0_4 = arith.constant 0 : index
    %3 = vector.load %arg3[%c0_3, %c0_4] : memref<1x256xf32, #tpu.memory_space<vmem>>, vector<1x256xf32>
    %4 = vector.broadcast %3 : vector<1x256xf32> to vector<8x256xf32>
    %5 = arith.addf %2, %4 : vector<8x256xf32>
    %cst_5 = arith.constant 0.000000e+00 : f32
    %6 = vector.broadcast %cst_5 : f32 to vector<8x256xf32>
    %7 = arith.maximumf %5, %6 : vector<8x256xf32>
    %c0_6 = arith.constant 0 : index
    %c0_7 = arith.constant 0 : index
    %8 = vector.load %arg4[%c0_6, %c0_7] : memref<256x256xf32, #tpu.memory_space<vmem>>, vector<256x256xf32>
    %cst_8 = arith.constant dense<0.000000e+00> : vector<8x256xf32>
    %9 = tpu.matmul %7, %8, %cst_8 {dimension_numbers = #tpu.dot_dimension_numbers<[1], [0], [0], [1], [0, 0, 1, 1], [], []>} : vector<8x256xf32>, vector<256x256xf32>, vector<8x256xf32> -> vector<8x256xf32>
    %c0_9 = arith.constant 0 : index
    %c0_10 = arith.constant 0 : index
    %10 = vector.load %arg5[%c0_9, %c0_10] : memref<1x256xf32, #tpu.memory_space<vmem>>, vector<1x256xf32>
    %11 = vector.broadcast %10 : vector<1x256xf32> to vector<8x256xf32>
    %12 = arith.addf %9, %11 : vector<8x256xf32>
    %cst_11 = arith.constant 0.000000e+00 : f32
    %13 = vector.broadcast %cst_11 : f32 to vector<8x256xf32>
    %14 = arith.maximumf %12, %13 : vector<8x256xf32>
    %c0_12 = arith.constant 0 : index
    %c0_13 = arith.constant 0 : index
    %15 = vector.load %arg6[%c0_12, %c0_13] : memref<256x128xf32, #tpu.memory_space<vmem>>, vector<256x128xf32>
    %cst_14 = arith.constant dense<0.000000e+00> : vector<8x128xf32>
    %16 = tpu.matmul %14, %15, %cst_14 {dimension_numbers = #tpu.dot_dimension_numbers<[1], [0], [0], [1], [0, 0, 1, 1], [], []>} : vector<8x256xf32>, vector<256x128xf32>, vector<8x128xf32> -> vector<8x128xf32>
    %c0_15 = arith.constant 0 : index
    %c0_16 = arith.constant 0 : index
    %17 = vector.load %arg7[%c0_15, %c0_16] : memref<1x128xf32, #tpu.memory_space<vmem>>, vector<1x128xf32>
    %18 = vector.broadcast %17 : vector<1x128xf32> to vector<8x128xf32>
    %19 = arith.addf %16, %18 : vector<8x128xf32>
    %20 = math.tanh %19 : vector<8x128xf32>
    %cst_17 = arith.constant 3.500000e+00 : f32
    %21 = vector.broadcast %cst_17 : f32 to vector<8x128xf32>
    %22 = arith.mulf %21, %20 : vector<8x128xf32>
    %cst_18 = arith.constant -1.500000e+00 : f32
    %23 = vector.broadcast %cst_18 : f32 to vector<8x128xf32>
    %24 = arith.addf %22, %23 : vector<8x128xf32>
    %25 = tpu.iota {dimensions = array<i32: 1>} : vector<8x128xi32>
    %c64_i32 = arith.constant 64 : i32
    %26 = vector.broadcast %c64_i32 : i32 to vector<8x128xi32>
    %27 = arith.cmpi slt, %25, %26 : vector<8x128xi32>
    %28 = arith.select %27, %19, %24 : vector<8x128xi1>, vector<8x128xf32>
    %c0_19 = arith.constant 0 : index
    %c0_20 = arith.constant 0 : index
    %29 = vector.load %arg8[%c0_19, %c0_20] : memref<8x128xf32, #tpu.memory_space<vmem>>, vector<8x128xf32>
    tpu.vector_store %arg8[%c0_19, %c0_20], %28 {strides = array<i32>} : memref<8x128xf32, #tpu.memory_space<vmem>>, vector<8x128xf32>,
    return
  }
  func.func @transform_0(%arg0: i32) -> (i32, i32) {
    %c0_i32 = arith.constant 0 : i32
    %c0_i32_0 = arith.constant 0 : i32
    return %arg0, %c0_i32 : i32, i32
  }
  func.func @transform_1(%arg0: i32) -> (i32, i32) {
    %c0_i32 = arith.constant 0 : i32
    %c0_i32_0 = arith.constant 0 : i32
    %c0_i32_1 = arith.constant 0 : i32
    return %c0_i32, %c0_i32_0 : i32, i32
  }
  func.func @transform_2(%arg0: i32) -> (i32, i32) {
    %c0_i32 = arith.constant 0 : i32
    %c0_i32_0 = arith.constant 0 : i32
    %c0_i32_1 = arith.constant 0 : i32
    return %c0_i32, %c0_i32_0 : i32, i32
  }
  func.func @transform_3(%arg0: i32) -> (i32, i32) {
    %c0_i32 = arith.constant 0 : i32
    %c0_i32_0 = arith.constant 0 : i32
    %c0_i32_1 = arith.constant 0 : i32
    return %c0_i32, %c0_i32_0 : i32, i32
  }
  func.func @transform_4(%arg0: i32) -> (i32, i32) {
    %c0_i32 = arith.constant 0 : i32
    %c0_i32_0 = arith.constant 0 : i32
    %c0_i32_1 = arith.constant 0 : i32
    return %c0_i32, %c0_i32_0 : i32, i32
  }
  func.func @transform_5(%arg0: i32) -> (i32, i32) {
    %c0_i32 = arith.constant 0 : i32
    %c0_i32_0 = arith.constant 0 : i32
    %c0_i32_1 = arith.constant 0 : i32
    return %c0_i32, %c0_i32_0 : i32, i32
  }
  func.func @transform_6(%arg0: i32) -> (i32, i32) {
    %c0_i32 = arith.constant 0 : i32
    %c0_i32_0 = arith.constant 0 : i32
    %c0_i32_1 = arith.constant 0 : i32
    return %c0_i32, %c0_i32_0 : i32, i32
  }
  func.func @transform_7(%arg0: i32) -> (i32, i32) {
    %c0_i32 = arith.constant 0 : i32
    %c0_i32_0 = arith.constant 0 : i32
    return %arg0, %c0_i32 : i32, i32
  }
}

</mosaic_0001>

<bundles_post_ra>
// kernel: tpu_custom_call.1
= control target key start
LH: loop header
LB: loop body
LE: loop exit
PB: predicated region body
PF: predicated region fallthrough
CT: control target
= control target key end

     0   :  { %12 = vsyncpa [#allocation3], 0  ;;  %s684_s0 = inlined_call_operand.hbm [shape: f32[8,8], index: 0, kind: input, shape index: {}]   ;;  %s685_s1 = inlined_call_operand.hbm [shape: f32[8,256], index: 1, kind: input, shape index: {}]   ;;  %s686_s2 = inlined_call_operand.vmem [shape: f32[1,256], index: 2, kind: input, shape index: {}]   ;;  %s687_s3 = inlined_call_operand.hbm [shape: f32[256,256], index: 3, kind: input, shape index: {}]   ;;  %s688_s4 = inlined_call_operand.vmem [shape: f32[1,256], index: 4, kind: input, shape index: {}]   ;;  %s689_s5 = inlined_call_operand.hbm [shape: f32[256,128], index: 5, kind: input, shape index: {}]   ;;  %s690_s6 = inlined_call_operand.vmem [shape: f32[1,128], index: 6, kind: input, shape index: {}]   ;;  %s691_s7 = inlined_call_operand.hbm [shape: f32[8,128], index: 7, kind: output, shape index: {}]  }
   0x1   :  { %13 = vsyncpa [#allocation6], 0 }
   0x2   :  { %14 = vsyncpa [#allocation9], 0 }
   0x3   :  { %15 = vsyncpa [#allocation4], 0  ;;  %s610_s24 = smov [#allocation5]   ;;  %s611_s26 = smov [#allocation2]  }
   0x4   :  { %s32_s25 = sshll.u32 %s610_s24, 4  ;;  %s22_s27 = sshll.u32 %s611_s26, 4  ;;  %s33_s25 = int_to_ptr.vmem [resolvable:$true] %s32_s25  ;;  %s23_s27 = int_to_ptr.vmem [resolvable:$true] %s22_s27 }
   0x5   :  { %s510_s28 = scalar_lea.vmem %s33_s25, 256  ;;  %p515_p1 = scmp.lt.s32.totalorder %s33_s25, %s33_s25 }
   0x6   :  { %p511_p0 = scmp.ne.s32.totalorder %s33_s25, %s510_s28  ;;  %p516_p2 = scmp.lt.s32.totalorder %s510_s28, %s510_s28 }
   0x8   :  { %p517_p3 = por %p516_p2, %p515_p1 }
   0xa   :  { %p518_p4 = pnand %p517_p3, %p511_p0 }
   0xc   :  { %521 = shalt.err (!%p518_p4)
}
   0xd   :  { %35 = dma.hbm_to_vmem [thread:$0]  %s685_s1, 256, %s33_s25, [#allocation6]  }
   0xe   :  { %s530_s8 = scalar_lea.vmem %s23_s27, 128  ;;  %p535_p6 = scmp.lt.s32.totalorder %s23_s27, %s23_s27 }
   0xf   :  { %p531_p5 = scmp.ne.s32.totalorder %s23_s27, %s530_s8  ;;  %p536_p7 = scmp.lt.s32.totalorder %s530_s8, %s530_s8 }
  0x11   :  { %p537_p8 = por %p536_p7, %p535_p6 }
  0x13   :  { %p538_p9 = pnand %p537_p8, %p531_p5 }
  0x15   :  { %541 = shalt.err (!%p538_p9)
}
  0x16   :  { %25 = dma.hbm_to_vmem [thread:$0]  %s684_s0, 128, %s23_s27, [#allocation3]  }
  0x17   :  { %s612_s11 = smov [#allocation7]  }
  0x18   :  { %s43_s12 = sshll.u32 %s612_s11, 4  ;;  %s44_s12 = int_to_ptr.vmem [resolvable:$true] %s43_s12 }
  0x19   :  { %s550_s13 = scalar_lea.vmem %s44_s12, 8192  ;;  %p555_p11 = scmp.lt.s32.totalorder %s44_s12, %s44_s12 }
  0x1a   :  { %p551_p10 = scmp.ne.s32.totalorder %s44_s12, %s550_s13  ;;  %p556_p12 = scmp.lt.s32.totalorder %s550_s13, %s550_s13 }
  0x1c   :  { %p557_p13 = por %p556_p12, %p555_p11 }
  0x1e   :  { %p558_p0 = pnand %p557_p13, %p551_p10 }
  0x20   :  { %561 = shalt.err (!%p558_p0)
}
  0x21   :  { %s613_s1 = smov 256   ;;  %s614_s14 = smov 16  }
  0x22   :  { %49 = dma.hbm_to_vmem [thread:$0]  %s687_s3, 8192, %s44_s12, [#allocation6], %s613_s1, %s613_s1, %s614_s14  }
  0x23   :  { %s615_s17 = smov [#allocation8]  }
  0x24   :  { %s57_s18 = sshll.u32 %s615_s17, 4  ;;  %s58_s18 = int_to_ptr.vmem [resolvable:$true] %s57_s18 }
  0x25   :  { %s570_s0 = scalar_lea.vmem %s58_s18, 4096  ;;  %p575_p2 = scmp.lt.s32.totalorder %s58_s18, %s58_s18 }
  0x26   :  { %p571_p1 = scmp.ne.s32.totalorder %s58_s18, %s570_s0  ;;  %p576_p3 = scmp.lt.s32.totalorder %s570_s0, %s570_s0 }
  0x28   :  { %p577_p4 = por %p576_p3, %p575_p2 }
  0x2a   :  { %p578_p5 = pnand %p577_p4, %p571_p1 }
  0x2c   :  { %581 = shalt.err (!%p578_p5)
}
  0x2d   :  { %s616_s19 = smov 128   ;;  %s617_s20 = smov 8  }
  0x2e   :  { %63 = dma.hbm_to_vmem [thread:$0]  %s689_s5, 4096, %s58_s18, [#allocation9], %s616_s19, %s616_s19, %s617_s20  }
  0x2f   :  { %602 = dma.done.wait [#allocation3], 128  }
  0x30   :  { %603 = vsyncadd [#allocation3], 4294967168 }
  0x31   :  { %604 = dma.done.wait [#allocation6], 8448  }
  0x32   :  { %605 = vsyncadd [#allocation6], 4294958848 }
  0x33   :  { %606 = dma.done.wait [#allocation9], 4096  }
  0x34   :  { %607 = vsyncadd [#allocation9], 4294963200  ;;  %v618_v0 = vmov 0.0   ;;  %v80_v1 = vld [vmem:[#allocation5 + $0x8] sm:$0xff]  ;;  %v79_v2 = vld [vmem:[#allocation5] sm:$0xff]  ;;  %vm93_vm0 = vcmask 64512  }
  0x35   :  { %161 = vmatprep.mubr.f32.mxu0 %v618_v0  ;;  %v78_v3 = vld [vmem:[#allocation2] sm:$0xff]  ;;  %127 = vmatprep.subr.mxu0 %v80_v1  ;;  %v201_v4 = vld [vmem:[#allocation7 + $0xf8] sm:$0xff]  ;;  %v200_v5 = vld [vmem:[#allocation7 + $0xf0] sm:$0xff] }
  0x36   :  { %v199_v6 = vld [vmem:[#allocation7 + $0xe8] sm:$0xff]  ;;  %128 = vmatpush1.msra.mxu0 %v79_v2  ;;  %246 = vmatprep.subr.mxu1 %v201_v4  ;;  %v198_v7 = vld [vmem:[#allocation7 + $0xe0] sm:$0xff]  ;;  %v197_v8 = vld [vmem:[#allocation7 + $0xd8] sm:$0xff] }
  0x37   :  { %453 = vmatmul.mubr.msk.f32.vlgmr.msra.gmra.mxu0 %vm93_vm0, %v78_v3  ;;  %247 = vmatpush1.msra.mxu1 %v200_v5  ;;  %v196_v9 = vld [vmem:[#allocation7 + $0xd0] sm:$0xff]  ;;  %v195_v10 = vld [vmem:[#allocation7 + $0xc8] sm:$0xff]  ;;  %v194_v11 = vld [vmem:[#allocation7 + $0xc0] sm:$0xff] }
  0x38   :  { %248 = vmatprep.subr.mxu1 %v199_v6  ;;  %v193_v12 = vld [vmem:[#allocation7 + $0xb8] sm:$0xff]  ;;  %v192_v13 = vld [vmem:[#allocation7 + $0xb0] sm:$0xff]  ;;  %v191_v14 = vld [vmem:[#allocation7 + $0xa8] sm:$0xff] }
  0x39   :  { %249 = vmatpush1.msra.mxu1 %v198_v7  ;;  %v190_v15 = vld [vmem:[#allocation7 + $0xa0] sm:$0xff]  ;;  %v189_v16 = vld [vmem:[#allocation7 + $0x98] sm:$0xff]  ;;  %v188_v17 = vld [vmem:[#allocation7 + $0x90] sm:$0xff] }
  0x3a   :  { %250 = vmatprep.subr.mxu1 %v197_v8  ;;  %v187_v18 = vld [vmem:[#allocation7 + $0x88] sm:$0xff]  ;;  %v186_v19 = vld [vmem:[#allocation7 + $0x80] sm:$0xff]  ;;  %v185_v20 = vld [vmem:[#allocation7 + $0x78] sm:$0xff] }
  0x3b   :  { %251 = vmatpush1.msra.mxu1 %v196_v9  ;;  %v184_v21 = vld [vmem:[#allocation7 + $0x70] sm:$0xff]  ;;  %v183_v22 = vld [vmem:[#allocation7 + $0x68] sm:$0xff]  ;;  %v182_v23 = vld [vmem:[#allocation7 + $0x60] sm:$0xff] }
  0x3c   :  { %252 = vmatprep.subr.mxu1 %v195_v10  ;;  %v181_v24 = vld [vmem:[#allocation7 + $0x58] sm:$0xff]  ;;  %v180_v25 = vld [vmem:[#allocation7 + $0x50] sm:$0xff]  ;;  %v179_v26 = vld [vmem:[#allocation7 + $0x48] sm:$0xff] }
  0x3d   :  { %253 = vmatpush1.msra.mxu1 %v194_v11  ;;  %v178_v27 = vld [vmem:[#allocation7 + $0x40] sm:$0xff]  ;;  %v177_v28 = vld [vmem:[#allocation7 + $0x38] sm:$0xff]  ;;  %v176_v29 = vld [vmem:[#allocation7 + $0x30] sm:$0xff] }
  0x3e   :  { %254 = vmatprep.subr.mxu1 %v193_v12  ;;  %v175_v30 = vld [vmem:[#allocation7 + $0x28] sm:$0xff]  ;;  %v174_v31 = vld [vmem:[#allocation7 + $0x20] sm:$0xff]  ;;  %v173_v32 = vld [vmem:[#allocation7 + $0x18] sm:$0xff] }
  0x3f   :  { %255 = vmatpush1.msra.mxu1 %v192_v13  ;;  %v172_v33 = vld [vmem:[#allocation7 + $0x10] sm:$0xff]  ;;  %v171_v34 = vld [vmem:[#allocation7 + $0x8] sm:$0xff]  ;;  %v170_v35 = vld [vmem:[#allocation7] sm:$0xff] }
  0x40   :  { %256 = vmatprep.subr.mxu1 %v191_v14  ;;  %v233_v36 = vld [vmem:[#allocation7 + $0x1f8] sm:$0xff]  ;;  %v232_v37 = vld [vmem:[#allocation7 + $0x1f0] sm:$0xff]  ;;  %v231_v38 = vld [vmem:[#allocation7 + $0x1e8] sm:$0xff] }
  0x41   :  { %257 = vmatpush1.msra.mxu1 %v190_v15  ;;  %v230_v39 = vld [vmem:[#allocation7 + $0x1e0] sm:$0xff]  ;;  %v229_v40 = vld [vmem:[#allocation7 + $0x1d8] sm:$0xff]  ;;  %v228_v41 = vld [vmem:[#allocation7 + $0x1d0] sm:$0xff] }
  0x42   :  { %258 = vmatprep.subr.mxu1 %v189_v16  ;;  %v227_v42 = vld [vmem:[#allocation7 + $0x1c8] sm:$0xff]  ;;  %v226_v43 = vld [vmem:[#allocation7 + $0x1c0] sm:$0xff]  ;;  %v225_v44 = vld [vmem:[#allocation7 + $0x1b8] sm:$0xff] }
  0x43   :  { %259 = vmatpush1.msra.mxu1 %v188_v17  ;;  %v224_v45 = vld [vmem:[#allocation7 + $0x1b0] sm:$0xff]  ;;  %v223_v46 = vld [vmem:[#allocation7 + $0x1a8] sm:$0xff]  ;;  %v222_v47 = vld [vmem:[#allocation7 + $0x1a0] sm:$0xff] }
  0x44   :  { %260 = vmatprep.subr.mxu1 %v187_v18  ;;  %v221_v48 = vld [vmem:[#allocation7 + $0x198] sm:$0xff]  ;;  %v220_v49 = vld [vmem:[#allocation7 + $0x190] sm:$0xff]  ;;  %v219_v50 = vld [vmem:[#allocation7 + $0x188] sm:$0xff] }
  0x45   :  { %261 = vmatpush1.msra.mxu1 %v186_v19  ;;  %v218_v51 = vld [vmem:[#allocation7 + $0x180] sm:$0xff]  ;;  %v217_v52 = vld [vmem:[#allocation7 + $0x178] sm:$0xff]  ;;  %v216_v53 = vld [vmem:[#allocation7 + $0x170] sm:$0xff] }
  0x46   :  { %262 = vmatprep.subr.mxu1 %v185_v20  ;;  %v215_v54 = vld [vmem:[#allocation7 + $0x168] sm:$0xff]  ;;  %v214_v55 = vld [vmem:[#allocation7 + $0x160] sm:$0xff]  ;;  %v213_v56 = vld [vmem:[#allocation7 + $0x158] sm:$0xff] }
  0x47   :  { %263 = vmatpush1.msra.mxu1 %v184_v21  ;;  %v212_v57 = vld [vmem:[#allocation7 + $0x150] sm:$0xff]  ;;  %v211_v58 = vld [vmem:[#allocation7 + $0x148] sm:$0xff]  ;;  %v210_v59 = vld [vmem:[#allocation7 + $0x140] sm:$0xff] }
  0x48   :  { %264 = vmatprep.subr.mxu1 %v183_v22  ;;  %v209_v60 = vld [vmem:[#allocation7 + $0x138] sm:$0xff]  ;;  %v208_v61 = vld [vmem:[#allocation7 + $0x130] sm:$0xff]  ;;  %v207_v62 = vld [vmem:[#allocation7 + $0x128] sm:$0xff] }
  0x49   :  { %265 = vmatpush1.msra.mxu1 %v182_v23  ;;  %v206_v63 = vld [vmem:[#allocation7 + $0x120] sm:$0xff]  ;;  %v205_v0 = vld [vmem:[#allocation7 + $0x118] sm:$0xff]  ;;  %v204_v1 = vld [vmem:[#allocation7 + $0x110] sm:$0xff] }
  0x4a   :  { %266 = vmatprep.subr.mxu1 %v181_v24  ;;  %v203_v2 = vld [vmem:[#allocation7 + $0x108] sm:$0xff]  ;;  %v202_v3 = vld [vmem:[#allocation7 + $0x100] sm:$0xff]  ;;  %v350_v4 = vld [vmem:[#allocation8 + $0xf8] sm:$0xff] }
  0x4b   :  { %267 = vmatpush1.msra.mxu1 %v180_v25  ;;  %v334_v5 = vld [vmem:[#allocation8 + $0x78] sm:$0xff]  ;;  %v349_v6 = vld [vmem:[#allocation8 + $0xf0] sm:$0xff]  ;;  %455 = vmatprep.subr.mxu0 %v350_v4  ;;  %v348_v8 = vld [vmem:[#allocation8 + $0xe8] sm:$0xff] }
  0x4c   :  { %268 = vmatprep.subr.mxu1 %v179_v26  ;;  %v333_v7 = vld [vmem:[#allocation8 + $0x70] sm:$0xff]  ;;  %456 = vmatpush3.msra.mxu0 %v334_v5  ;;  %v332_v9 = vld [vmem:[#allocation8 + $0x68] sm:$0xff]  ;;  %v347_v10 = vld [vmem:[#allocation8 + $0xe0] sm:$0xff] }
  0x4d   :  { %269 = vmatpush1.msra.mxu1 %v178_v27  ;;  %457 = vmatprep.subr.mxu0 %v349_v6  ;;  %v331_v11 = vld [vmem:[#allocation8 + $0x60] sm:$0xff]  ;;  %v346_v12 = vld [vmem:[#allocation8 + $0xd8] sm:$0xff]  ;;  %v345_v14 = vld [vmem:[#allocation8 + $0xd0] sm:$0xff] }
  0x4e   :  { %270 = vmatprep.subr.mxu1 %v177_v28  ;;  %458 = vmatpush3.msra.mxu0 %v333_v7  ;;  %v330_v13 = vld [vmem:[#allocation8 + $0x58] sm:$0xff]  ;;  %v329_v15 = vld [vmem:[#allocation8 + $0x50] sm:$0xff]  ;;  %v344_v16 = vld [vmem:[#allocation8 + $0xc8] sm:$0xff]  ;;  %v83_v28 = vlaneseq }
  0x4f   :  { %271 = vmatpush1.msra.mxu1 %v176_v29  ;;  %459 = vmatprep.subr.mxu0 %v348_v8  ;;  %v328_v17 = vld [vmem:[#allocation8 + $0x48] sm:$0xff]  ;;  %v343_v18 = vld [vmem:[#allocation8 + $0xc0] sm:$0xff]  ;;  %v342_v20 = vld [vmem:[#allocation8 + $0xb8] sm:$0xff] }
  0x50   :  { %272 = vmatprep.subr.mxu1 %v175_v30  ;;  %460 = vmatpush3.msra.mxu0 %v332_v9  ;;  %v327_v19 = vld [vmem:[#allocation8 + $0x40] sm:$0xff]  ;;  %v326_v21 = vld [vmem:[#allocation8 + $0x38] sm:$0xff]  ;;  %v341_v22 = vld [vmem:[#allocation8 + $0xb0] sm:$0xff]  ;;  %v84_v29 = vshrl.u32 %v83_v28, 7 }
  0x51   :  { %273 = vmatpush1.msra.mxu1 %v174_v31  ;;  %461 = vmatprep.subr.mxu0 %v347_v10  ;;  %v325_v23 = vld [vmem:[#allocation8 + $0x30] sm:$0xff]  ;;  %v340_v24 = vld [vmem:[#allocation8 + $0xa8] sm:$0xff]  ;;  %v339_v26 = vld [vmem:[#allocation8 + $0xa0] sm:$0xff] }
  0x52   :  { %274 = vmatprep.subr.mxu1 %v173_v32  ;;  %462 = vmatpush3.msra.mxu0 %v331_v11  ;;  %v324_v25 = vld [vmem:[#allocation8 + $0x28] sm:$0xff]  ;;  %v323_v27 = vld [vmem:[#allocation8 + $0x20] sm:$0xff]  ;;  %v85_v30 = vsub.s32 0, %v84_v29  ;;  %v89_v32 = vsub.s32 1, %v84_v29 }
  0x53   :  { %275 = vmatpush1.msra.mxu1 %v172_v33  ;;  %463 = vmatprep.subr.mxu0 %v346_v12  ;;  %v81_v31 = vld [vmem:[%s686_s2] sm:$0x3] }
  0x54   :  { %276 = vmatprep.subr.mxu1 %v171_v34  ;;  %464 = vmatpush3.msra.mxu0 %v330_v13  ;;  %v86_v33 = vrot.slane %v81_v31, %v85_v30  ;;  %v90_v34 = vrot.slane %v81_v31, %v89_v32 }
  0x55   :  { %277 = vmatpush1.msra.mxu1 %v170_v35  ;;  %465 = vmatprep.subr.mxu0 %v345_v14 }
  0x56   :  { %278 = vmatprep.subr.mxu1 %v233_v36  ;;  %466 = vmatpush3.msra.mxu0 %v329_v15 }
  0x57   :  { %279 = vmatpush2.msra.mxu1 %v232_v37  ;;  %467 = vmatprep.subr.mxu0 %v344_v16 }
  0x58   :  { %280 = vmatprep.subr.mxu1 %v231_v38  ;;  %468 = vmatpush3.msra.mxu0 %v328_v17 }
  0x59   :  { %281 = vmatpush2.msra.mxu1 %v230_v39  ;;  %469 = vmatprep.subr.mxu0 %v343_v18 }
  0x5a   :  { %282 = vmatprep.subr.mxu1 %v229_v40  ;;  %470 = vmatpush3.msra.mxu0 %v327_v19 }
  0x5b   :  { %283 = vmatpush2.msra.mxu1 %v228_v41  ;;  %471 = vmatprep.subr.mxu0 %v342_v20  ;;  %v338_v41 = vld [vmem:[#allocation8 + $0x98] sm:$0xff] }
  0x5c   :  { %284 = vmatprep.subr.mxu1 %v227_v42  ;;  %472 = vmatpush3.msra.mxu0 %v326_v21  ;;  %v322_v42 = vld [vmem:[#allocation8 + $0x18] sm:$0xff] }
  0x5d   :  { %285 = vmatpush2.msra.mxu1 %v226_v43  ;;  %473 = vmatprep.subr.mxu0 %v341_v22  ;;  %v337_v43 = vld [vmem:[#allocation8 + $0x90] sm:$0xff] }
  0x5e   :  { %286 = vmatprep.subr.mxu1 %v225_v44  ;;  %474 = vmatpush3.msra.mxu0 %v325_v23  ;;  %v321_v44 = vld [vmem:[#allocation8 + $0x10] sm:$0xff] }
  0x5f   :  { %287 = vmatpush2.msra.mxu1 %v224_v45  ;;  %475 = vmatprep.subr.mxu0 %v340_v24  ;;  %v336_v45 = vld [vmem:[#allocation8 + $0x88] sm:$0xff] }
  0x60   :  { %288 = vmatprep.subr.mxu1 %v223_v46  ;;  %476 = vmatpush3.msra.mxu0 %v324_v25  ;;  %v320_v46 = vld [vmem:[#allocation8 + $0x8] sm:$0xff] }
  0x61   :  { %289 = vmatpush2.msra.mxu1 %v222_v47  ;;  %477 = vmatprep.subr.mxu0 %v339_v26  ;;  %v335_v47 = vld [vmem:[#allocation8 + $0x80] sm:$0xff] }
  0x62   :  { %290 = vmatprep.subr.mxu1 %v221_v48  ;;  %478 = vmatpush3.msra.mxu0 %v323_v27  ;;  %v319_v48 = vld [vmem:[#allocation8] sm:$0xff] }
  0x63   :  { %291 = vmatpush2.msra.mxu1 %v220_v49  ;;  %479 = vmatprep.subr.mxu0 %v338_v41  ;;  %v234_v49 = vld [vmem:[%s688_s4] sm:$0x3]  ;;  %s619_s4 = smov [#allocation10]  }
  0x64   :  { %292 = vmatprep.subr.mxu1 %v219_v50  ;;  %480 = vmatpush3.msra.mxu0 %v322_v42  ;;  %v239_v50 = vrot.slane %v234_v49, %v85_v30  ;;  %s442_s26 = sshll.u32 %s619_s4, 4  ;;  %s443_s26 = int_to_ptr.vmem [resolvable:$true] %s442_s26 }
  0x65   :  { %293 = vmatpush2.msra.mxu1 %v218_v51  ;;  %481 = vmatprep.subr.mxu0 %v337_v43  ;;  %v243_v51 = vrot.slane %v234_v49, %v89_v32  ;;  %s582_s27 = scalar_lea.vmem %s443_s26, 128  ;;  %p587_p7 = scmp.lt.s32.totalorder %s443_s26, %s443_s26 }
  0x66   :  { %294 = vmatprep.subr.mxu1 %v217_v52  ;;  %482 = vmatpush3.msra.mxu0 %v321_v44  ;;  %p583_p6 = scmp.ne.s32.totalorder %s443_s26, %s582_s27  ;;  %p588_p8 = scmp.lt.s32.totalorder %s582_s27, %s582_s27 }
  0x67   :  { %295 = vmatpush2.msra.mxu1 %v216_v53  ;;  %483 = vmatprep.subr.mxu0 %v336_v45 }
  0x68   :  { %296 = vmatprep.subr.mxu1 %v215_v54  ;;  %484 = vmatpush3.msra.mxu0 %v320_v46  ;;  %p589_p9 = por %p588_p8, %p587_p7 }
  0x69   :  { %297 = vmatpush2.msra.mxu1 %v214_v55  ;;  %485 = vmatprep.subr.mxu0 %v335_v47 }
  0x6a   :  { %298 = vmatprep.subr.mxu1 %v213_v56  ;;  %486 = vmatpush3.msra.mxu0 %v319_v48  ;;  %p590_p10 = pnand %p589_p9, %p583_p6 }
  0x6b   :  { %299 = vmatpush2.msra.mxu1 %v212_v57 }
  0x6c   :  { %300 = vmatprep.subr.mxu1 %v211_v58 }
  0x6d   :  { %301 = vmatpush2.msra.mxu1 %v210_v59  ;;  %v454_v59 = vld [vmem:[%s690_s6] ss:$0 sm:$0xff] }
  0x6e   :  { %302 = vmatprep.subr.mxu1 %v209_v60 }
  0x6f   :  { %303 = vmatpush2.msra.mxu1 %v208_v61 }
  0x70   :  { %304 = vmatprep.subr.mxu1 %v207_v62 }
  0x71   :  { %305 = vmatpush2.msra.mxu1 %v206_v63  ;;  %v432_v63 = vand.u32 127, %v83_v28 }
  0x72   :  { %306 = vmatprep.subr.mxu1 %v205_v0 }
  0x73   :  { %307 = vmatpush2.msra.mxu1 %v204_v1  ;;  %vm433_vm1 = vcmp.lt.s32.totalorder %v432_v63, 64 }
  0x74   :  { %308 = vmatprep.subr.mxu1 %v203_v2 }
  0x75   :  { %309 = vmatpush2.msra.mxu1 %v202_v3 }
  0xf7   :  { %v163_v35 = vpop.f32.mrf.mxu0 }
  0xf8   :  { %v164_v36 = vadd.f32 %v163_v35, %v86_v33 }
  0xf9   :  { %v165_v37 = vpop.f32.mrf.mxu0 }
  0xfa   :  { %v166_v38 = vadd.f32 %v165_v37, %v90_v34  ;;  %v168_v40 = vmax.f32 %v164_v36, 0.0 }
  0xfc   :  { %v169_v39 = vmax.f32 %v166_v38, 0.0 }
  0xfe   :  { %310 = vmatprep.mubr.f32.mxu1 %v169_v39 }
  0xff   :  { %311 = vmatmul.mubr.f32.vlgmr.msra.gmra.mxu1 %v168_v40 }
 0x1bf   :  { %v312_v52 = vpop.f32.mrf.mxu1 }
 0x1c0   :  { %v313_v53 = vadd.f32 %v312_v52, %v239_v50 }
 0x1c1   :  { %v314_v54 = vpop.f32.mrf.mxu1 }
 0x1c2   :  { %v315_v55 = vadd.f32 %v314_v54, %v243_v51  ;;  %v317_v57 = vmax.f32 %v313_v53, 0.0 }
 0x1c4   :  { %v318_v56 = vmax.f32 %v315_v55, 0.0 }
 0x1c6   :  { %422 = vmatprep.mubr.f32.mxu0 %v318_v56 }
 0x1c7   :  { %423 = vmatmul.mubr.f32.vlgmr.msra.gmra.mxu0 %v317_v57 }
 0x287   :  { %v487_v58 = vpop.f32.mrf.mxu0 }
 0x289   :  { %v488_v60 = vpop.f32.mrf.mxu0 }
 0x28a   :  { %v489_v61 = vadd.f32 %v488_v60, %v487_v58 }
 0x28c   :  { %v425_v62 = vadd.f32 %v489_v61, %v454_v59 }
 0x28e   :  { %500 = vtanh.f32 %v425_v62 }
 0x29b   :  { %v501_v0 = vpop.eup %500 }
 0x29c   :  { %v429_v1 = vmul.f32 3.5, %v501_v0 }
 0x29e   :  { %v430_v2 = vadd.f32 -1.5, %v429_v1 }
 0x2a0   :  { %v434_v3 = vsel %vm433_vm1, %v425_v62, %v430_v2 }
 0x2a1   :  { %435 = vst [vmem:[#allocation10] sm:$0xff] %v434_v3 }
 0x2a2   :  { %593 = shalt.err (!%p590_p10)
}
 0x2a3   :  { %445 = dma.vmem_to_hbm [thread:$0]  %s443_s26, 128, %s691_s7, [#allocation4]  }
 0x2a4   :  { %608 = dma.done.wait [#allocation4], 128  }
 0x2a5   :  { %609 = vsyncadd [#allocation4], 4294967168 }
 0x2a6   :  { %449 = vsyncpa [#allocation3], 1 }
 0x2a7   :  { %450 = vsyncpa [#allocation6], 1 }
 0x2a8   :  { %451 = vsyncpa [#allocation9], 1 }
 0x2a9   :  { %452 = vsyncpa [#allocation4], 1 }

</bundles_post_ra>
